<compile_context>
chip_gen: v5e
topology: v5e:2x2
jax: 0.10.0
libtpu: 0.0.40
codegen_flags: <defaults>
</compile_context>

<pallas_src>
import jax
import jax.numpy as jnp
import numpy as np
from jax.experimental import pallas as pl
from jax.experimental.pallas import tpu as pltpu

NEURON = 64
_H2 = 2 * NEURON        # both twin branches packed side by side -> 128 lanes
_MAX_TB = 2048          # batch-tile cap: fits default scoped VMEM on v5e/v6e/v7x


def _round_up(x, m):
    return ((x + m - 1) // m) * m


def _qactor_fused_kernel(xs_ref, xa_ref,
                         w1s_ref, w1p_ref, b1_ref,
                         w2_ref, b2_ref,
                         w3_ref, b3_ref,
                         out_ref):
    """Fused twin-Q forward for one batch tile.

    xs_ref : [TB, S]     f32   state tile
    xa_ref : [TB, P]     f32   action-parameter tile
    w1s/w1p: [S,128]/[P,128] bf16 layer-1 weight, rows split (no input concat)
    w2     : [128, 128]  bf16  block_diag(w1b, w2b)
    w3     : [128, 2A]   bf16  block_diag(w1c, w1c)  (Q2 reuses layers_1[-1])
    b*     :             f32   biases
    out    : [TB, 2A]    f32   [q1 | q2]
    """
    xs = xs_ref[...].astype(jnp.bfloat16)
    xa = xa_ref[...].astype(jnp.bfloat16)

    # Layer 1 (split-K avoids a wrapper-side concat + HBM round trip of x).
    h = (jnp.dot(xs, w1s_ref[...], preferred_element_type=jnp.float32)
         + jnp.dot(xa, w1p_ref[...], preferred_element_type=jnp.float32)
         + b1_ref[...])
    h = jnp.maximum(h, 0.0)

    # Layer 2: one 128-lane matmul covering both branches (block-diag weight).
    h = (jnp.dot(h.astype(jnp.bfloat16), w2_ref[...],
                 preferred_element_type=jnp.float32) + b2_ref[...])
    h = jnp.maximum(h, 0.0)

    # Layer 3: both output blocks use layers_1[-1] (matches the PyTorch code).
    out_ref[...] = (jnp.dot(h.astype(jnp.bfloat16), w3_ref[...],
                            preferred_element_type=jnp.float32) + b3_ref[...])


def pack_params(params, state_size, action_size):
    """One-time (outside the hot path) packing of twin-branch weights."""
    out_w = 2 * action_size                                # exact, no lane pad

    # Layer 1: columns concatenated, rows split into state / action-param parts.
    w1 = jnp.concatenate([params["w1a"], params["w2a"]], axis=1)      # [S+P,128]
    w1_state = w1[:state_size].astype(jnp.bfloat16)                   # [S, 128]
    w1_ap = w1[state_size:].astype(jnp.bfloat16)                      # [P, 128]
    b1 = jnp.concatenate([params["b1a"], params["b2a"]], axis=1)      # [1, 128]

    # Layer 2: block-diagonal (no cross terms between branches).
    w2 = jnp.zeros((_H2, _H2), jnp.float32)
    w2 = w2.at[:NEURON, :NEURON].set(params["w1b"])
    w2 = w2.at[NEURON:, NEURON:].set(params["w2b"])
    b2 = jnp.concatenate([params["b1b"], params["b2b"]], axis=1)      # [1, 128]

    # Layer 3: block-diagonal, BOTH blocks = layers_1[-1] (original forward quirk).
    w3 = jnp.zeros((_H2, out_w), jnp.float32)
    w3 = w3.at[:NEURON, :action_size].set(params["w1c"])
    w3 = w3.at[NEURON:, action_size:].set(params["w1c"])
    b3 = jnp.concatenate([params["b1c"], params["b1c"]], axis=1)      # [1, 2A]

    return {"w1_state": w1_state, "w1_ap": w1_ap,
            "b1": b1.astype(jnp.float32),
            "w2": w2.astype(jnp.bfloat16), "b2": b2.astype(jnp.float32),
            "w3": w3.astype(jnp.bfloat16), "b3": b3.astype(jnp.float32)}


def _choose_tile(batch):
    """Sublane-aligned batch tile; >= 2 grid steps when possible (v7x megacore)."""
    tb = _round_up(max(batch, 1), 8)
    if tb >= 16:
        tb = _round_up(-(-batch // 2), 8)   # split batch across >= 2 tiles
    return min(tb, _MAX_TB)


def qactor_forward(state, action_parameters, packed):
    """Single pallas_call over a batch grid; returns (Q1, Q2)."""
    B, S = state.shape
    P = action_parameters.shape[1]
    out_w = packed["w3"].shape[1]
    action_size = out_w // 2

    xs = state.astype(jnp.float32)
    xa = action_parameters.astype(jnp.float32)

    tb = _choose_tile(B)
    grid = (pl.cdiv(B, tb),)     # partial last block handled by Pallas masking

    def _resident(shape):        # weights: same block every step -> stay in VMEM
        return pl.BlockSpec(shape, lambda i: (0, 0))

    flops = 2 * B * ((S + P) * _H2 + _H2 * _H2 + _H2 * out_w)
    bytes_accessed = (4 * B * (S + P)                                  # f32 inputs
                      + 2 * ((S + P) * _H2 + _H2 * _H2 + _H2 * out_w)  # bf16 weights
                      + 4 * (2 * _H2 + out_w)                          # f32 biases
                      + 4 * B * out_w)                                 # f32 output

    out = pl.pallas_call(
        _qactor_fused_kernel,
        out_shape=jax.ShapeDtypeStruct((B, out_w), jnp.float32),
        grid_spec=pltpu.PrefetchScalarGridSpec(
            num_scalar_prefetch=0,
            grid=grid,
            in_specs=[
                pl.BlockSpec((tb, S), lambda i: (i, 0)),   # state tile
                pl.BlockSpec((tb, P), lambda i: (i, 0)),   # action-param tile
                _resident((S, _H2)),                       # w1_state
                _resident((P, _H2)),                       # w1_ap
                _resident((1, _H2)),                       # b1
                _resident((_H2, _H2)),                     # w2
                _resident((1, _H2)),                       # b2
                _resident((_H2, out_w)),                   # w3
                _resident((1, out_w)),                     # b3
            ],
            out_specs=pl.BlockSpec((tb, out_w), lambda i: (i, 0)),
        ),
        compiler_params=pltpu.CompilerParams(
            dimension_semantics=("parallel",)),
        cost_estimate=pl.CostEstimate(flops=flops, transcendentals=0,
                                      bytes_accessed=bytes_accessed),
    )(xs, xa,
      packed["w1_state"], packed["w1_ap"], packed["b1"],
      packed["w2"], packed["b2"],
      packed["w3"], packed["b3"])

    q1 = out[:, :action_size]
    q2 = out[:, action_size:]
    return q1, q2


def init_params(key, state_size, action_size, action_parameter_size):
    """Mimics PyTorch nn.Linear default init; weights stored as [in, out]."""
    input_size = state_size + action_parameter_size

    def linear(key, fan_in, fan_out):
        kw, kb = jax.random.split(key)
        bound = 1.0 / np.sqrt(fan_in)
        w = jax.random.uniform(kw, (fan_in, fan_out), jnp.float32, -bound, bound)
        b = jax.random.uniform(kb, (1, fan_out), jnp.float32, -bound, bound)
        return w, b

    keys = jax.random.split(key, 6)
    w1a, b1a = linear(keys[0], input_size, NEURON)
    w1b, b1b = linear(keys[1], NEURON, NEURON)
    w1c, b1c = linear(keys[2], NEURON, action_size)
    w2a, b2a = linear(keys[3], input_size, NEURON)
    w2b, b2b = linear(keys[4], NEURON, NEURON)
    # layers_2[-1] exists in the module but is never used in forward() (original bug).
    w2c, b2c = linear(keys[5], NEURON, action_size)

    return {
        "w1a": w1a, "b1a": b1a, "w1b": w1b, "b1b": b1b, "w1c": w1c, "b1c": b1c,
        "w2a": w2a, "b2a": b2a, "w2b": w2b, "b2b": b2b, "w2c": w2c, "b2c": b2c,
    }


def qactor_forward_ref(state, action_parameters, params):
    """Pure-JAX f32 reference for correctness checking (unpacked weights)."""
    x = jnp.concatenate([state, action_parameters], axis=1).astype(jnp.float32)
    h1 = jax.nn.relu(x @ params["w1a"] + params["b1a"])
    h1 = jax.nn.relu(h1 @ params["w1b"] + params["b1b"])
    q1 = h1 @ params["w1c"] + params["b1c"]
    h2 = jax.nn.relu(x @ params["w2a"] + params["b2a"])
    h2 = jax.nn.relu(h2 @ params["w2b"] + params["b2b"])
    q2 = h2 @ params["w1c"] + params["b1c"]   # layers_1[-1], matching PyTorch code
    return q1, q2


if __name__ == "__main__":
    batch = 8
    state_size = 12
    action_size = 6
    action_parameter_size = 20

    key = jax.random.PRNGKey(0)
    k_params, k_state, k_ap = jax.random.split(key, 3)

    params = init_params(k_params, state_size, action_size, action_parameter_size)
    packed = pack_params(params, state_size, action_size)      # one-time packing

    state = jax.random.normal(k_state, (batch, state_size), jnp.float32)
    action_parameters = jax.random.normal(
        k_ap, (batch, action_parameter_size), jnp.float32)

    fwd = jax.jit(qactor_forward)
    q1, q2 = fwd(state, action_parameters, packed)
    q1 = jax.block_until_ready(q1)
    q2 = jax.block_until_ready(q2)

    # bf16 matmul operands (f32 accumulate) -> compare against f32 reference
    # with correspondingly loosened tolerances.
    q1_ref, q2_ref = qactor_forward_ref(state, action_parameters, params)
    np.testing.assert_allclose(np.asarray(q1), np.asarray(q1_ref), rtol=3e-2, atol=3e-2)
    np.testing.assert_allclose(np.asarray(q2), np.asarray(q2_ref), rtol=3e-2, atol=3e-2)

    print("KERNEL_OK")
</pallas_src>

<mosaic_0001>
module attributes {stable_mosaic.version = 11 : i64} {
  func.func @_qactor_fused_kernel(%arg0: i32, %arg1: memref<8x12xf32, #tpu.memory_space<vmem>>, %arg2: memref<8x20xf32, #tpu.memory_space<vmem>>, %arg3: memref<12x128xbf16, #tpu.memory_space<vmem>>, %arg4: memref<20x128xbf16, #tpu.memory_space<vmem>>, %arg5: memref<1x128xf32, #tpu.memory_space<vmem>>, %arg6: memref<128x128xbf16, #tpu.memory_space<vmem>>, %arg7: memref<1x128xf32, #tpu.memory_space<vmem>>, %arg8: memref<128x12xbf16, #tpu.memory_space<vmem>>, %arg9: memref<1x12xf32, #tpu.memory_space<vmem>>, %arg10: memref<8x12xf32, #tpu.memory_space<vmem>>) attributes {dimension_semantics = [#tpu.dimension_semantics<parallel>], iteration_bounds = array<i64: 1>, scalar_prefetch = 0 : i64, scratch_operands = 0 : i64, tpu.core_type = #tpu.core_type<tc>, window_params = [{transform_indices = @transform_0, window_bounds = array<i64: 8, 12>}, {transform_indices = @transform_1, window_bounds = array<i64: 8, 20>}, {pipeline_mode = #tpu.pipeline_mode<synchronous>, transform_indices = @transform_2, window_bounds = array<i64: 12, 128>}, {pipeline_mode = #tpu.pipeline_mode<synchronous>, transform_indices = @transform_3, window_bounds = array<i64: 20, 128>}, {pipeline_mode = #tpu.pipeline_mode<synchronous>, transform_indices = @transform_4, window_bounds = array<i64: 1, 128>}, {pipeline_mode = #tpu.pipeline_mode<synchronous>, transform_indices = @transform_5, window_bounds = array<i64: 128, 128>}, {pipeline_mode = #tpu.pipeline_mode<synchronous>, transform_indices = @transform_6, window_bounds = array<i64: 1, 128>}, {pipeline_mode = #tpu.pipeline_mode<synchronous>, transform_indices = @transform_7, window_bounds = array<i64: 128, 12>}, {pipeline_mode = #tpu.pipeline_mode<synchronous>, transform_indices = @transform_8, window_bounds = array<i64: 1, 12>}, {transform_indices = @transform_9, window_bounds = array<i64: 8, 12>}]} {
    %c0 = arith.constant 0 : index
    %c0_0 = arith.constant 0 : index
    %0 = vector.load %arg1[%c0, %c0_0] : memref<8x12xf32, #tpu.memory_space<vmem>>, vector<8x12xf32>
    %1 = arith.truncf %0 : vector<8x12xf32> to vector<8x12xbf16>
    %c0_1 = arith.constant 0 : index
    %c0_2 = arith.constant 0 : index
    %2 = vector.load %arg2[%c0_1, %c0_2] : memref<8x20xf32, #tpu.memory_space<vmem>>, vector<8x20xf32>
    %3 = arith.truncf %2 : vector<8x20xf32> to vector<8x20xbf16>
    %c0_3 = arith.constant 0 : index
    %c0_4 = arith.constant 0 : index
    %4 = vector.load %arg3[%c0_3, %c0_4] : memref<12x128xbf16, #tpu.memory_space<vmem>>, vector<12x128xbf16>
    %cst = arith.constant dense<0.000000e+00> : vector<8x128xf32>
    %5 = tpu.matmul %1, %4, %cst {dimension_numbers = #tpu.dot_dimension_numbers<[1], [0], [0], [1], [0, 0, 1, 1], [], []>} : vector<8x12xbf16>, vector<12x128xbf16>, vector<8x128xf32> -> vector<8x128xf32>
    %c0_5 = arith.constant 0 : index
    %c0_6 = arith.constant 0 : index
    %6 = vector.load %arg4[%c0_5, %c0_6] : memref<20x128xbf16, #tpu.memory_space<vmem>>, vector<20x128xbf16>
    %cst_7 = arith.constant dense<0.000000e+00> : vector<8x128xf32>
    %7 = tpu.matmul %3, %6, %cst_7 {dimension_numbers = #tpu.dot_dimension_numbers<[1], [0], [0], [1], [0, 0, 1, 1], [], []>} : vector<8x20xbf16>, vector<20x128xbf16>, vector<8x128xf32> -> vector<8x128xf32>
    %8 = arith.addf %5, %7 : vector<8x128xf32>
    %c0_8 = arith.constant 0 : index
    %c0_9 = arith.constant 0 : index
    %9 = vector.load %arg5[%c0_8, %c0_9] : memref<1x128xf32, #tpu.memory_space<vmem>>, vector<1x128xf32>
    %10 = vector.broadcast %9 : vector<1x128xf32> to vector<8x128xf32>
    %11 = arith.addf %8, %10 : vector<8x128xf32>
    %cst_10 = arith.constant 0.000000e+00 : f32
    %12 = vector.broadcast %cst_10 : f32 to vector<8x128xf32>
    %13 = arith.maximumf %11, %12 : vector<8x128xf32>
    %14 = arith.truncf %13 : vector<8x128xf32> to vector<8x128xbf16>
    %c0_11 = arith.constant 0 : index
    %c0_12 = arith.constant 0 : index
    %15 = vector.load %arg6[%c0_11, %c0_12] : memref<128x128xbf16, #tpu.memory_space<vmem>>, vector<128x128xbf16>
    %cst_13 = arith.constant dense<0.000000e+00> : vector<8x128xf32>
    %16 = tpu.matmul %14, %15, %cst_13 {dimension_numbers = #tpu.dot_dimension_numbers<[1], [0], [0], [1], [0, 0, 1, 1], [], []>} : vector<8x128xbf16>, vector<128x128xbf16>, vector<8x128xf32> -> vector<8x128xf32>
    %c0_14 = arith.constant 0 : index
    %c0_15 = arith.constant 0 : index
    %17 = vector.load %arg7[%c0_14, %c0_15] : memref<1x128xf32, #tpu.memory_space<vmem>>, vector<1x128xf32>
    %18 = vector.broadcast %17 : vector<1x128xf32> to vector<8x128xf32>
    %19 = arith.addf %16, %18 : vector<8x128xf32>
    %cst_16 = arith.constant 0.000000e+00 : f32
    %20 = vector.broadcast %cst_16 : f32 to vector<8x128xf32>
    %21 = arith.maximumf %19, %20 : vector<8x128xf32>
    %22 = arith.truncf %21 : vector<8x128xf32> to vector<8x128xbf16>
    %c0_17 = arith.constant 0 : index
    %c0_18 = arith.constant 0 : index
    %23 = vector.load %arg8[%c0_17, %c0_18] : memref<128x12xbf16, #tpu.memory_space<vmem>>, vector<128x12xbf16>
    %cst_19 = arith.constant dense<0.000000e+00> : vector<8x12xf32>
    %24 = tpu.matmul %22, %23, %cst_19 {dimension_numbers = #tpu.dot_dimension_numbers<[1], [0], [0], [1], [0, 0, 1, 1], [], []>} : vector<8x128xbf16>, vector<128x12xbf16>, vector<8x12xf32> -> vector<8x12xf32>
    %c0_20 = arith.constant 0 : index
    %c0_21 = arith.constant 0 : index
    %25 = vector.load %arg9[%c0_20, %c0_21] : memref<1x12xf32, #tpu.memory_space<vmem>>, vector<1x12xf32>
    %26 = vector.broadcast %25 : vector<1x12xf32> to vector<8x12xf32>
    %27 = arith.addf %24, %26 : vector<8x12xf32>
    %c0_22 = arith.constant 0 : index
    %c0_23 = arith.constant 0 : index
    %28 = vector.load %arg10[%c0_22, %c0_23] : memref<8x12xf32, #tpu.memory_space<vmem>>, vector<8x12xf32>
    tpu.vector_store %arg10[%c0_22, %c0_23], %27 {strides = array<i32>} : memref<8x12xf32, #tpu.memory_space<vmem>>, vector<8x12xf32>,
    return
  }
  func.func @transform_0(%arg0: i32) -> (i32, i32) {
    %c0_i32 = arith.constant 0 : i32
    %c0_i32_0 = arith.constant 0 : i32
    return %arg0, %c0_i32 : i32, i32
  }
  func.func @transform_1(%arg0: i32) -> (i32, i32) {
    %c0_i32 = arith.constant 0 : i32
    %c0_i32_0 = arith.constant 0 : i32
    return %arg0, %c0_i32 : i32, i32
  }
  func.func @transform_2(%arg0: i32) -> (i32, i32) {
    %c0_i32 = arith.constant 0 : i32
    %c0_i32_0 = arith.constant 0 : i32
    %c0_i32_1 = arith.constant 0 : i32
    return %c0_i32, %c0_i32_0 : i32, i32
  }
  func.func @transform_3(%arg0: i32) -> (i32, i32) {
    %c0_i32 = arith.constant 0 : i32
    %c0_i32_0 = arith.constant 0 : i32
    %c0_i32_1 = arith.constant 0 : i32
    return %c0_i32, %c0_i32_0 : i32, i32
  }
  func.func @transform_4(%arg0: i32) -> (i32, i32) {
    %c0_i32 = arith.constant 0 : i32
    %c0_i32_0 = arith.constant 0 : i32
    %c0_i32_1 = arith.constant 0 : i32
    return %c0_i32, %c0_i32_0 : i32, i32
  }
  func.func @transform_5(%arg0: i32) -> (i32, i32) {
    %c0_i32 = arith.constant 0 : i32
    %c0_i32_0 = arith.constant 0 : i32
    %c0_i32_1 = arith.constant 0 : i32
    return %c0_i32, %c0_i32_0 : i32, i32
  }
  func.func @transform_6(%arg0: i32) -> (i32, i32) {
    %c0_i32 = arith.constant 0 : i32
    %c0_i32_0 = arith.constant 0 : i32
    %c0_i32_1 = arith.constant 0 : i32
    return %c0_i32, %c0_i32_0 : i32, i32
  }
  func.func @transform_7(%arg0: i32) -> (i32, i32) {
    %c0_i32 = arith.constant 0 : i32
    %c0_i32_0 = arith.constant 0 : i32
    %c0_i32_1 = arith.constant 0 : i32
    return %c0_i32, %c0_i32_0 : i32, i32
  }
  func.func @transform_8(%arg0: i32) -> (i32, i32) {
    %c0_i32 = arith.constant 0 : i32
    %c0_i32_0 = arith.constant 0 : i32
    %c0_i32_1 = arith.constant 0 : i32
    return %c0_i32, %c0_i32_0 : i32, i32
  }
  func.func @transform_9(%arg0: i32) -> (i32, i32) {
    %c0_i32 = arith.constant 0 : i32
    %c0_i32_0 = arith.constant 0 : i32
    return %arg0, %c0_i32 : i32, i32
  }
}

</mosaic_0001>

<bundles_post_ra>
// kernel: qactor_forward.1
= control target key start
LH: loop header
LB: loop body
LE: loop exit
PB: predicated region body
PF: predicated region fallthrough
CT: control target
= control target key end

     0   :  { %14 = vsyncpa [#allocation3], 0  ;;  %s670_s0 = inlined_call_operand.hbm [shape: f32[8,12], index: 0, kind: input, shape index: {}]   ;;  %s671_s1 = inlined_call_operand.hbm [shape: f32[8,20], index: 1, kind: input, shape index: {}]   ;;  %s672_s2 = inlined_call_operand.hbm [shape: bf16[12,128], index: 2, kind: input, shape index: {}]   ;;  %s673_s3 = inlined_call_operand.vmem [shape: bf16[20,128], index: 3, kind: input, shape index: {}]   ;;  %s674_s4 = inlined_call_operand.vmem [shape: f32[1,128], index: 4, kind: input, shape index: {}]   ;;  %s675_s5 = inlined_call_operand.vmem [shape: bf16[128,128], index: 5, kind: input, shape index: {}]   ;;  %s676_s6 = inlined_call_operand.vmem [shape: f32[1,128], index: 6, kind: input, shape index: {}]   ;;  %s677_s7 = inlined_call_operand.vmem [shape: bf16[128,12], index: 7, kind: input, shape index: {}]   ;;  %s678_s8 = inlined_call_operand.hbm [shape: f32[1,12], index: 8, kind: input, shape index: {}]   ;;  %s679_s9 = inlined_call_operand.vmem [shape: f32[8,12], index: 9, kind: output, shape index: {}]  }
   0x1   :  { %15 = vsyncpa [#allocation5], 0  ;;  %s33_s11 = sshll.u32 %s671_s1, 4  ;;  %s34_s11 = int_to_ptr.hbm [resolvable:$true] %s33_s11 }
   0x2   :  { %16 = vsyncpa [#allocation8], 0  ;;  %s537_s12 = smov [#allocation4]   ;;  %s22_s16 = sshll.u32 %s670_s0, 4  ;;  %s23_s16 = int_to_ptr.hbm [resolvable:$true] %s22_s16 }
   0x3   :  { %s35_s13 = sshll.u32 %s537_s12, 4  ;;  %s538_s17 = smov [#allocation2]   ;;  %s36_s13 = int_to_ptr.vmem [resolvable:$true] %s35_s13 }
   0x4   :  { %38 = dma.hbm_to_vmem [thread:$0]  %s34_s11, 128, %s36_s13, [#allocation5]  }
   0x5   :  { %s24_s18 = sshll.u32 %s538_s17, 4  ;;  %s43_s21 = sshll.u32 %s672_s2, 4  ;;  %s25_s18 = int_to_ptr.vmem [resolvable:$true] %s24_s18  ;;  %s44_s21 = int_to_ptr.hbm [resolvable:$true] %s43_s21 }
   0x6   :  { %27 = dma.hbm_to_vmem [thread:$0]  %s23_s16, 128, %s25_s18, [#allocation3]  }
   0x7   :  { %s539_s1 = smov [#allocation6]   ;;  %s67_s25 = sshll.u32 %s678_s8, 4  ;;  %s68_s25 = int_to_ptr.hbm [resolvable:$true] %s67_s25 }
   0x8   :  { %s45_s22 = sshll.u32 %s539_s1, 4  ;;  %s540_s26 = smov 64   ;;  %s46_s22 = int_to_ptr.vmem [resolvable:$true] %s45_s22 }
   0x9   :  { %s541_s0 = smov 4   ;;  %s542_s27 = smov [#allocation7]  }
   0xa   :  { %51 = dma.hbm_to_vmem [thread:$0]  %s44_s21, 128, %s46_s22, [#allocation5], %s540_s26, %s540_s26, %s541_s0  }
   0xb   :  { %s69_s28 = sshll.u32 %s542_s27, 4  ;;  %s70_s28 = int_to_ptr.vmem [resolvable:$true] %s69_s28 }
   0xc   :  { %72 = dma.hbm_to_vmem [thread:$0]  %s68_s25, 16, %s70_s28, [#allocation8]  }
   0xd   :  { %531 = dma.done.wait [#allocation3], 128  }
   0xe   :  { %532 = vsyncadd [#allocation3], 4294967168 }
   0xf   :  { %533 = dma.done.wait [#allocation5], 256  }
  0x10   :  { %534 = vsyncadd [#allocation5], 4294967040 }
  0x11   :  { %535 = dma.done.wait [#allocation8], 16  }
  0x12   :  { %536 = vsyncadd [#allocation8], 4294967280  ;;  %vm138_vm0 = vcmask 1045504   ;;  %v341_v0 = vld [vmem:[#allocation6] sm:$0xf]  ;;  %v90_v5 = vld [vmem:[#allocation2] sm:$0xff] }
  0x13   :  { %v408_v1 = vld [vmem:[#allocation6] sm:$0x30]  ;;  %v98_v2 = vld [vmem:[%s673_s3 + $0x8] sm:$0x3]  ;;  %vm112_vm1 = vcmask 1041408   ;;  %v417_v6 = vld [vmem:[%s675_s5 + $0x38] sm:$0xff]  ;;  %v91_v9 = vpack.c.bf16 %v90_v5, %v90_v5 }
  0x14   :  { %v342_v3 = vor.u32 %v408_v1, %v341_v0  ;;  %v104_v4 = vunpack.c.l.b16 %v98_v2  ;;  %vm134_vm2 = vcmask 97280   ;;  %230 = vmatpush.bf16.msra.mxu2 %v417_v6  ;;  %v416_v10 = vld [vmem:[%s675_s5 + $0x30] sm:$0xff]  ;;  %v409_v12 = vld [vmem:[%s673_s3] sm:$0xff]  ;;  %v92_v13 = vld [vmem:[#allocation4] sm:$0xff]  ;;  %vm108_vm3 = vcmask 162816  }
  0x15   :  { %v415_v14 = vld [vmem:[%s675_s5 + $0x28] sm:$0xff]  ;;  %v93_v15 = vpack.c.bf16 %v92_v13, %v92_v13  ;;  %v414_v16 = vld [vmem:[%s675_s5 + $0x20] sm:$0xff]  ;;  %v413_v17 = vld [vmem:[%s675_s5 + $0x18] sm:$0xff] }
  0x16   :  { %v140_v7 = vsel %vm138_vm0, %v342_v3, 0  ;;  %v106_v8 = vpack.c.b16 %v104_v4, %v104_v4  ;;  %v412_v18 = vld [vmem:[%s675_s5 + $0x10] sm:$0xff]  ;;  %v411_v19 = vld [vmem:[%s675_s5 + $0x8] sm:$0xff]  ;;  %v410_v20 = vld [vmem:[%s675_s5] sm:$0xff] }
  0x17   :  { %149 = vmatpush.bf16.msra.mxu1 %v140_v7  ;;  %v425_v21 = vld [vmem:[%s677_s7 + $0x38] sm:$0xff]  ;;  %v424_v22 = vld [vmem:[%s677_s7 + $0x30] sm:$0xff]  ;;  %v423_v23 = vld [vmem:[%s677_s7 + $0x28] sm:$0xff] }
  0x18   :  { %v114_v11 = vsel %vm112_vm1, %v106_v8, 0  ;;  %231 = vmatpush.bf16.msra.mxu2 %v416_v10  ;;  %313 = vmatpush.bf16.msra.mxu3 %v425_v21  ;;  %v422_v24 = vld [vmem:[%s677_s7 + $0x20] sm:$0xff]  ;;  %v421_v25 = vld [vmem:[%s677_s7 + $0x18] sm:$0xff]  ;;  %v420_v27 = vld [vmem:[%s677_s7 + $0x10] sm:$0xff] }
  0x19   :  { %122 = vmatpush.bf16.msra.mxu0 %v114_v11  ;;  %v432_v28 = vld [vmem:[%s674_s4] ss:$0 sm:$0xff]  ;;  %v419_v36 = vld [vmem:[%s677_s7 + $0x8] sm:$0xff]  ;;  %v434_v44 = vld [vmem:[#allocation7] ss:$0 sm:$0xff] }
  0x1a   :  { %343 = vmatmul.msk.bf16.vlgmr.msra.gmra.mxu1 %vm134_vm2, %v91_v9  ;;  %v418_v37 = vld [vmem:[%s677_s7] sm:$0xff] }
  0x1b   :  { %v433_v38 = vld [vmem:[%s676_s6] ss:$0 sm:$0xff] }
  0x1c   :  { %232 = vmatpush.bf16.msra.mxu2 %v415_v14  ;;  %314 = vmatpush.bf16.msra.mxu3 %v424_v22 }
  0x1d   :  { %123 = vmatpush.bf16.msra.mxu0 %v409_v12 }
  0x20   :  { %338 = vmatmul.msk.bf16.vlgmr.msra.gmra.mxu0 %vm108_vm3, %v93_v15  ;;  %233 = vmatpush.bf16.msra.mxu2 %v414_v16 }
  0x21   :  { %315 = vmatpush.bf16.msra.mxu3 %v423_v23 }
  0x24   :  { %234 = vmatpush.bf16.msra.mxu2 %v413_v17 }
  0x25   :  { %316 = vmatpush.bf16.msra.mxu3 %v422_v24 }
  0x28   :  { %235 = vmatpush.bf16.msra.mxu2 %v412_v18 }
  0x29   :  { %317 = vmatpush.bf16.msra.mxu3 %v421_v25 }
  0x2c   :  { %236 = vmatpush.bf16.msra.mxu2 %v411_v19 }
  0x2d   :  { %318 = vmatpush.bf16.msra.mxu3 %v420_v27 }
  0x30   :  { %237 = vmatpush.bf16.msra.mxu2 %v410_v20 }
  0x31   :  { %319 = vmatpush.bf16.msra.mxu3 %v419_v36 }
  0x35   :  { %320 = vmatpush.bf16.msra.mxu3 %v418_v37 }
  0x97   :  { %v151_v26 = vpop.f32.mrf.mxu1 }
  0x9d   :  { %v125_v29 = vpop.f32.mrf.mxu0 }
  0x9e   :  { %v152_v30 = vadd.f32 %v151_v26, %v125_v29 }
  0x9f   :  { %v153_v31 = vpop.f32.mrf.mxu1 }
  0xa0   :  { %v159_v32 = vadd.f32 %v432_v28, %v152_v30 }
  0xa2   :  { %v160_v33 = vmax.f32 %v159_v32, 0.0 }
  0xa4   :  { %v161_v34 = vpack.c.bf16 %v160_v33, %v160_v33 }
  0xa5   :  { %v127_v35 = vpop.f32.mrf.mxu0 }
  0xa6   :  { %238 = vmatmul.bf16.vlgmr.msra.gmra.mxu2 %v161_v34 }
 0x129   :  { %v239_v39 = vpop.f32.mrf.mxu2 }
 0x12a   :  { %v240_v40 = vadd.f32 %v433_v38, %v239_v39 }
 0x12c   :  { %v243_v41 = vmax.f32 %v240_v40, 0.0 }
 0x12e   :  { %v244_v42 = vpack.c.bf16 %v243_v41, %v243_v41 }
 0x130   :  { %321 = vmatmul.bf16.vlgmr.msra.gmra.mxu3 %v244_v42 }
 0x131   :  { %v241_v43 = vpop.f32.mrf.mxu2 }
 0x1b3   :  { %v322_v45 = vpop.f32.mrf.mxu3 }
 0x1b4   :  { %v323_v46 = vadd.f32 %v434_v44, %v322_v45 }
 0x1b6   :  { %326 = vst.msk [vmem:[%s679_s9] sm:$0xff] %vm134_vm2, %v323_v46 }
 0x1bb   :  { %v324_v47 = vpop.f32.mrf.mxu3 }
 0x1bc   :  { %331 = vsyncpa [#allocation3], 1 }
 0x1bd   :  { %332 = vsyncpa [#allocation5], 1 }
 0x1be   :  { %333 = vsyncpa [#allocation8], 1 }

</bundles_post_ra>
